<compile_context>
chip_gen: v5e
topology: v5e:2x2
jax: 0.10.0
libtpu: 0.0.40
codegen_flags: <defaults>
</compile_context>

<pallas_src>
import jax
import jax.numpy as jnp
from jax.experimental import pallas as pl
from jax.experimental.pallas import tpu as pltpu

LN_EPS = 1e-5  # torch.nn.LayerNorm default


def _layer_norm(x):
    # Normalize-only LayerNorm (affine folded into the next Linear).
    # One-pass moments: mean and E[x^2] are independent cross-lane reductions.
    mean = jnp.mean(x, axis=-1, keepdims=True)
    mean_sq = jnp.mean(x * x, axis=-1, keepdims=True)
    var = mean_sq - mean * mean
    return (x - mean) * jax.lax.rsqrt(var + LN_EPS)


def critic_kernel(x_ref, w1_ref, b1_ref, w2_ref, b2_ref, wv_ref, bv_ref, out_ref):
    # Feature LayerNorm on the raw centralized observation (affine folded into w1/b1).
    x = _layer_norm(x_ref[...].astype(jnp.float32))

    # Hidden layer 1: Linear (bf16 operands, f32 accumulate) -> ReLU -> LayerNorm.
    h = jnp.dot(x.astype(jnp.bfloat16), w1_ref[...],
                preferred_element_type=jnp.float32) + b1_ref[...]
    h = _layer_norm(jnp.maximum(h, 0.0))

    # Hidden layer 2: Linear (bf16 operands, f32 accumulate) -> ReLU -> LayerNorm.
    h = jnp.dot(h.astype(jnp.bfloat16), w2_ref[...],
                preferred_element_type=jnp.float32) + b2_ref[...]
    h = _layer_norm(jnp.maximum(h, 0.0))

    # v_out: (1, h2) . (tb, h2)^T -> (1, tb) lane-dense row (unmasked stores,
    # dense writeback DMA) instead of a narrow (tb, 1) column.
    v_row = jax.lax.dot_general(
        wv_ref[...], h.astype(jnp.bfloat16),
        dimension_numbers=(((1,), (1,)), ((), ())),
        preferred_element_type=jnp.float32)
    out_ref[0] = v_row + bv_ref[...]


def _round8(x):
    return max(8, (x // 8) * 8)


def _choose_tile_and_vmem(B, obs_dim, h1, h2, obs_itemsize, tile_b=None):
    """Generation-aware batch-tile size and scoped-VMEM limit."""
    try:
        vmem_cap = int(getattr(pltpu.get_tpu_info(), "vmem_capacity_bytes", 64 << 20))
    except Exception:  # be conservative (v7x-class) if the query is unavailable
        vmem_cap = 64 << 20
    if vmem_cap > (96 << 20):          # 128-MiB parts: v5e / v6e
        vmem_limit, hard_cap = 100 << 20, 4096
    else:                              # 64-MiB parts: v7x
        vmem_limit, hard_cap = 48 << 20, 2048

    # Rough per-batch-row VMEM bytes: double-buffered obs tile + f32 x + bf16 copy per
    # obs feature, f32 + bf16 activation per hidden feature, + lane-dense f32 output.
    per_row = (2 * obs_itemsize + 6) * obs_dim + 6 * (h1 + h2) + 8
    # Resident (constant-index-map) params, counted double-buffered: bf16 weights + f32 biases.
    resident = 2 * (2 * (obs_dim * h1 + h1 * h2 + h2) + 4 * (h1 + h2 + 1))
    budget = int(vmem_limit * 0.8) - resident
    cap = max(8, budget // max(per_row, 1))

    tb = min(cap, hard_cap if tile_b is None else tile_b)
    tb = _round8(min(tb, B))
    if B >= 16:
        # Guarantee >= 2 grid steps so the "parallel" axis spans both v7x TensorCores
        # (costs one ~0.35us grid step on single-TC parts — negligible).
        tb = min(tb, _round8(pl.cdiv(B, 2)))
    return tb, vmem_limit


def prepare_params(params):
    """One-time host precompute: fold every LayerNorm affine into the next Linear and
    cast matmul weights to bf16 (biases stay f32)."""
    f32 = lambda a: jnp.asarray(a, jnp.float32)
    w1, b1 = f32(params["w1"]), f32(params["b1"]).reshape(1, -1)
    w2, b2 = f32(params["w2"]), f32(params["b2"]).reshape(1, -1)
    wv, bv = f32(params["wv"]).reshape(-1), f32(params["bv"]).reshape(1, 1)
    fn_g, fn_b = f32(params["fn_g"]).reshape(-1), f32(params["fn_b"]).reshape(-1)
    ln1_g, ln1_b = f32(params["ln1_g"]).reshape(-1), f32(params["ln1_b"]).reshape(-1)
    ln2_g, ln2_b = f32(params["ln2_g"]).reshape(-1), f32(params["ln2_b"]).reshape(-1)

    w1f = fn_g[:, None] * w1                       # fold feature-LN affine into layer 1
    b1f = b1 + fn_b[None, :] @ w1
    w2f = ln1_g[:, None] * w2                      # fold LN1 affine into layer 2
    b2f = b2 + ln1_b[None, :] @ w2
    wvf = (ln2_g * wv)[None, :]                    # fold LN2 affine into v_out
    bvf = bv + (ln2_b @ wv).reshape(1, 1)

    return {
        "w1": w1f.astype(jnp.bfloat16), "b1": b1f,
        "w2": w2f.astype(jnp.bfloat16), "b2": b2f,
        "wv": wvf.astype(jnp.bfloat16), "bv": bvf,
    }


def critic_forward(cent_obs, folded, *, tile_b=None):
    """Batch-tiled pallas_call: obs tiles are auto-pipelined, folded weights stay
    VMEM-resident via constant index maps.  cent_obs may be f32 or bf16 (upcast in-kernel)."""
    B, obs_dim = cent_obs.shape
    h1 = folded["w1"].shape[1]
    h2 = folded["w2"].shape[1]

    tb, vmem_limit = _choose_tile_and_vmem(B, obs_dim, h1, h2,
                                           cent_obs.dtype.itemsize, tile_b)
    num_tiles = pl.cdiv(B, tb)

    def const2d(shape):
        # Constant block index -> resident across the whole grid, no per-step re-DMA.
        return pl.BlockSpec(shape, lambda i: (0, 0))

    out = pl.pallas_call(
        critic_kernel,
        out_shape=jax.ShapeDtypeStruct((num_tiles, 1, tb), jnp.float32),
        grid=(num_tiles,),
        in_specs=[
            pl.BlockSpec((tb, obs_dim), lambda i: (i, 0)),   # obs tile (ragged last block OK)
            const2d((obs_dim, h1)), const2d((1, h1)),        # w1, b1
            const2d((h1, h2)), const2d((1, h2)),             # w2, b2
            const2d((1, h2)), const2d((1, 1)),               # wv row, bv
        ],
        out_specs=pl.BlockSpec((1, 1, tb), lambda i: (i, 0, 0)),
        compiler_params=pltpu.CompilerParams(
            dimension_semantics=("parallel",),
            vmem_limit_bytes=vmem_limit,
        ),
    )(cent_obs, folded["w1"], folded["b1"], folded["w2"], folded["b2"],
      folded["wv"], folded["bv"])

    # Tiny wrapper-side reshape (num_tiles*tb f32) — negligible vs. the removed obs pad.
    return out.reshape(-1)[:B].reshape(B, 1)


def init_params(key, obs_dim, hidden_sizes):
    """Deterministic params mirroring the torch module: orthogonal weights (relu gain for
    hidden, gain=1 / bias=0 for v_out), zero biases, LayerNorm gamma=1 / beta=0."""
    # TODO(synk): kernel is specialized to exactly 2 hidden layers (hidden_sizes=[h1, h2]).
    h1, h2 = hidden_sizes
    k1, k2, k3 = jax.random.split(key, 3)
    relu_gain = jnp.sqrt(2.0)
    ortho = jax.nn.initializers.orthogonal()
    f32 = lambda x: x.astype(jnp.float32)
    return {
        "fn_g": jnp.ones((1, obs_dim), jnp.float32),
        "fn_b": jnp.zeros((1, obs_dim), jnp.float32),
        "w1": f32(ortho(k1, (obs_dim, h1)) * relu_gain),
        "b1": jnp.zeros((1, h1), jnp.float32),
        "ln1_g": jnp.ones((1, h1), jnp.float32),
        "ln1_b": jnp.zeros((1, h1), jnp.float32),
        "w2": f32(ortho(k2, (h1, h2)) * relu_gain),
        "b2": jnp.zeros((1, h2), jnp.float32),
        "ln2_g": jnp.ones((1, h2), jnp.float32),
        "ln2_b": jnp.zeros((1, h2), jnp.float32),
        "wv": f32(ortho(k3, (h2, 1))),
        "bv": jnp.zeros((1, 1), jnp.float32),
    }


def critic_reference(cent_obs, p):
    """Pure-JAX f32 reference with torch semantics (two-pass LN, un-folded affines)."""
    def ln(x, g, b):
        mean = jnp.mean(x, axis=-1, keepdims=True)
        var = jnp.mean((x - mean) ** 2, axis=-1, keepdims=True)
        return (x - mean) * jax.lax.rsqrt(var + LN_EPS) * g + b
    x = ln(cent_obs, p["fn_g"], p["fn_b"])
    h = ln(jnp.maximum(x @ p["w1"] + p["b1"], 0.0), p["ln1_g"], p["ln1_b"])
    h = ln(jnp.maximum(h @ p["w2"] + p["b2"], 0.0), p["ln2_g"], p["ln2_b"])
    return h @ p["wv"] + p["bv"]


if __name__ == "__main__":
    OBS_DIM = 16
    HIDDEN_SIZES = [32, 32]

    key = jax.random.PRNGKey(0)
    k_obs, k_par = jax.random.split(key)
    params = init_params(k_par, OBS_DIM, HIDDEN_SIZES)
    folded = prepare_params(params)

    # Case 1: batch divisible by the tile (single grid step at demo size).
    B = 8
    cent_obs = jax.random.normal(k_obs, (B, OBS_DIM), dtype=jnp.float32)
    values = jax.block_until_ready(critic_forward(cent_obs, folded))
    ref = critic_reference(cent_obs, params)
    assert values.shape == (B, 1)
    # bf16 MXU operands (f32 accumulation) => small drift vs the pure-f32 reference.
    assert jnp.allclose(values, ref, atol=5e-2, rtol=5e-2)

    # Case 2: ragged batch (exercises the masked last block — no wrapper-side pad).
    B2 = 13
    cent_obs2 = jax.random.normal(jax.random.PRNGKey(1), (B2, OBS_DIM), dtype=jnp.float32)
    values2 = jax.block_until_ready(critic_forward(cent_obs2, folded))
    ref2 = critic_reference(cent_obs2, params)
    assert values2.shape == (B2, 1)
    assert jnp.allclose(values2, ref2, atol=5e-2, rtol=5e-2)
    assert bool(jnp.all(jnp.isfinite(values2)))

    print("KERNEL_OK")
</pallas_src>

<mosaic_0001>
module attributes {stable_mosaic.version = 11 : i64} {
  func.func @critic_kernel(%arg0: i32, %arg1: memref<8x16xf32, #tpu.memory_space<vmem>>, %arg2: memref<16x32xbf16, #tpu.memory_space<vmem>>, %arg3: memref<1x32xf32, #tpu.memory_space<vmem>>, %arg4: memref<32x32xbf16, #tpu.memory_space<vmem>>, %arg5: memref<1x32xf32, #tpu.memory_space<vmem>>, %arg6: memref<1x32xbf16, #tpu.memory_space<vmem>>, %arg7: memref<1x1xf32, #tpu.memory_space<vmem>>, %arg8: memref<1x1x8xf32, #tpu.memory_space<vmem>>) attributes {dimension_semantics = [#tpu.dimension_semantics<parallel>], iteration_bounds = array<i64: 1>, scalar_prefetch = 0 : i64, scratch_operands = 0 : i64, tpu.core_type = #tpu.core_type<tc>, window_params = [{transform_indices = @transform_0, window_bounds = array<i64: 8, 16>}, {pipeline_mode = #tpu.pipeline_mode<synchronous>, transform_indices = @transform_1, window_bounds = array<i64: 16, 32>}, {pipeline_mode = #tpu.pipeline_mode<synchronous>, transform_indices = @transform_2, window_bounds = array<i64: 1, 32>}, {pipeline_mode = #tpu.pipeline_mode<synchronous>, transform_indices = @transform_3, window_bounds = array<i64: 32, 32>}, {pipeline_mode = #tpu.pipeline_mode<synchronous>, transform_indices = @transform_4, window_bounds = array<i64: 1, 32>}, {pipeline_mode = #tpu.pipeline_mode<synchronous>, transform_indices = @transform_5, window_bounds = array<i64: 1, 32>}, {pipeline_mode = #tpu.pipeline_mode<synchronous>, transform_indices = @transform_6, window_bounds = array<i64: 1, 1>}, {transform_indices = @transform_7, window_bounds = array<i64: 1, 1, 8>}]} {
    %c0 = arith.constant 0 : index
    %c0_0 = arith.constant 0 : index
    %0 = vector.load %arg1[%c0, %c0_0] : memref<8x16xf32, #tpu.memory_space<vmem>>, vector<8x16xf32>
    %cst = arith.constant dense<0.000000e+00> : vector<8xf32>
    %1 = vector.multi_reduction <add>, %0, %cst [1] : vector<8x16xf32> to vector<8xf32>
    %2 = vector.shape_cast %1 : vector<8xf32> to vector<8x1xf32>
    %cst_1 = arith.constant 1.600000e+01 : f32
    %3 = vector.broadcast %cst_1 : f32 to vector<8x1xf32>
    %4 = arith.divf %2, %3 : vector<8x1xf32>
    %5 = arith.mulf %0, %0 : vector<8x16xf32>
    %cst_2 = arith.constant dense<0.000000e+00> : vector<8xf32>
    %6 = vector.multi_reduction <add>, %5, %cst_2 [1] : vector<8x16xf32> to vector<8xf32>
    %7 = vector.shape_cast %6 : vector<8xf32> to vector<8x1xf32>
    %cst_3 = arith.constant 1.600000e+01 : f32
    %8 = vector.broadcast %cst_3 : f32 to vector<8x1xf32>
    %9 = arith.divf %7, %8 : vector<8x1xf32>
    %10 = arith.mulf %4, %4 : vector<8x1xf32>
    %11 = arith.subf %9, %10 : vector<8x1xf32>
    %12 = vector.broadcast %4 : vector<8x1xf32> to vector<8x16xf32>
    %13 = arith.subf %0, %12 : vector<8x16xf32>
    %cst_4 = arith.constant 9.99999974E-6 : f32
    %14 = vector.broadcast %cst_4 : f32 to vector<8x1xf32>
    %15 = arith.addf %11, %14 : vector<8x1xf32>
    %16 = math.rsqrt %15 : vector<8x1xf32>
    %17 = vector.broadcast %16 : vector<8x1xf32> to vector<8x16xf32>
    %18 = arith.mulf %13, %17 : vector<8x16xf32>
    %19 = arith.truncf %18 : vector<8x16xf32> to vector<8x16xbf16>
    %c0_5 = arith.constant 0 : index
    %c0_6 = arith.constant 0 : index
    %20 = vector.load %arg2[%c0_5, %c0_6] : memref<16x32xbf16, #tpu.memory_space<vmem>>, vector<16x32xbf16>
    %cst_7 = arith.constant dense<0.000000e+00> : vector<8x32xf32>
    %21 = tpu.matmul %19, %20, %cst_7 {dimension_numbers = #tpu.dot_dimension_numbers<[1], [0], [0], [1], [0, 0, 1, 1], [], []>} : vector<8x16xbf16>, vector<16x32xbf16>, vector<8x32xf32> -> vector<8x32xf32>
    %c0_8 = arith.constant 0 : index
    %c0_9 = arith.constant 0 : index
    %22 = vector.load %arg3[%c0_8, %c0_9] : memref<1x32xf32, #tpu.memory_space<vmem>>, vector<1x32xf32>
    %23 = vector.broadcast %22 : vector<1x32xf32> to vector<8x32xf32>
    %24 = arith.addf %21, %23 : vector<8x32xf32>
    %cst_10 = arith.constant 0.000000e+00 : f32
    %25 = vector.broadcast %cst_10 : f32 to vector<8x32xf32>
    %26 = arith.maximumf %24, %25 : vector<8x32xf32>
    %cst_11 = arith.constant dense<0.000000e+00> : vector<8xf32>
    %27 = vector.multi_reduction <add>, %26, %cst_11 [1] : vector<8x32xf32> to vector<8xf32>
    %28 = vector.shape_cast %27 : vector<8xf32> to vector<8x1xf32>
    %cst_12 = arith.constant 3.200000e+01 : f32
    %29 = vector.broadcast %cst_12 : f32 to vector<8x1xf32>
    %30 = arith.divf %28, %29 : vector<8x1xf32>
    %31 = arith.mulf %26, %26 : vector<8x32xf32>
    %cst_13 = arith.constant dense<0.000000e+00> : vector<8xf32>
    %32 = vector.multi_reduction <add>, %31, %cst_13 [1] : vector<8x32xf32> to vector<8xf32>
    %33 = vector.shape_cast %32 : vector<8xf32> to vector<8x1xf32>
    %cst_14 = arith.constant 3.200000e+01 : f32
    %34 = vector.broadcast %cst_14 : f32 to vector<8x1xf32>
    %35 = arith.divf %33, %34 : vector<8x1xf32>
    %36 = arith.mulf %30, %30 : vector<8x1xf32>
    %37 = arith.subf %35, %36 : vector<8x1xf32>
    %38 = vector.broadcast %30 : vector<8x1xf32> to vector<8x32xf32>
    %39 = arith.subf %26, %38 : vector<8x32xf32>
    %cst_15 = arith.constant 9.99999974E-6 : f32
    %40 = vector.broadcast %cst_15 : f32 to vector<8x1xf32>
    %41 = arith.addf %37, %40 : vector<8x1xf32>
    %42 = math.rsqrt %41 : vector<8x1xf32>
    %43 = vector.broadcast %42 : vector<8x1xf32> to vector<8x32xf32>
    %44 = arith.mulf %39, %43 : vector<8x32xf32>
    %45 = arith.truncf %44 : vector<8x32xf32> to vector<8x32xbf16>
    %c0_16 = arith.constant 0 : index
    %c0_17 = arith.constant 0 : index
    %46 = vector.load %arg4[%c0_16, %c0_17] : memref<32x32xbf16, #tpu.memory_space<vmem>>, vector<32x32xbf16>
    %cst_18 = arith.constant dense<0.000000e+00> : vector<8x32xf32>
    %47 = tpu.matmul %45, %46, %cst_18 {dimension_numbers = #tpu.dot_dimension_numbers<[1], [0], [0], [1], [0, 0, 1, 1], [], []>} : vector<8x32xbf16>, vector<32x32xbf16>, vector<8x32xf32> -> vector<8x32xf32>
    %c0_19 = arith.constant 0 : index
    %c0_20 = arith.constant 0 : index
    %48 = vector.load %arg5[%c0_19, %c0_20] : memref<1x32xf32, #tpu.memory_space<vmem>>, vector<1x32xf32>
    %49 = vector.broadcast %48 : vector<1x32xf32> to vector<8x32xf32>
    %50 = arith.addf %47, %49 : vector<8x32xf32>
    %cst_21 = arith.constant 0.000000e+00 : f32
    %51 = vector.broadcast %cst_21 : f32 to vector<8x32xf32>
    %52 = arith.maximumf %50, %51 : vector<8x32xf32>
    %cst_22 = arith.constant dense<0.000000e+00> : vector<8xf32>
    %53 = vector.multi_reduction <add>, %52, %cst_22 [1] : vector<8x32xf32> to vector<8xf32>
    %54 = vector.shape_cast %53 : vector<8xf32> to vector<8x1xf32>
    %cst_23 = arith.constant 3.200000e+01 : f32
    %55 = vector.broadcast %cst_23 : f32 to vector<8x1xf32>
    %56 = arith.divf %54, %55 : vector<8x1xf32>
    %57 = arith.mulf %52, %52 : vector<8x32xf32>
    %cst_24 = arith.constant dense<0.000000e+00> : vector<8xf32>
    %58 = vector.multi_reduction <add>, %57, %cst_24 [1] : vector<8x32xf32> to vector<8xf32>
    %59 = vector.shape_cast %58 : vector<8xf32> to vector<8x1xf32>
    %cst_25 = arith.constant 3.200000e+01 : f32
    %60 = vector.broadcast %cst_25 : f32 to vector<8x1xf32>
    %61 = arith.divf %59, %60 : vector<8x1xf32>
    %62 = arith.mulf %56, %56 : vector<8x1xf32>
    %63 = arith.subf %61, %62 : vector<8x1xf32>
    %64 = vector.broadcast %56 : vector<8x1xf32> to vector<8x32xf32>
    %65 = arith.subf %52, %64 : vector<8x32xf32>
    %cst_26 = arith.constant 9.99999974E-6 : f32
    %66 = vector.broadcast %cst_26 : f32 to vector<8x1xf32>
    %67 = arith.addf %63, %66 : vector<8x1xf32>
    %68 = math.rsqrt %67 : vector<8x1xf32>
    %69 = vector.broadcast %68 : vector<8x1xf32> to vector<8x32xf32>
    %70 = arith.mulf %65, %69 : vector<8x32xf32>
    %c0_27 = arith.constant 0 : index
    %c0_28 = arith.constant 0 : index
    %71 = vector.load %arg6[%c0_27, %c0_28] : memref<1x32xbf16, #tpu.memory_space<vmem>>, vector<1x32xbf16>
    %72 = arith.truncf %70 : vector<8x32xf32> to vector<8x32xbf16>
    %cst_29 = arith.constant dense<0.000000e+00> : vector<1x8xf32>
    %73 = tpu.matmul %71, %72, %cst_29 {dimension_numbers = #tpu.dot_dimension_numbers<[1], [1], [0], [0], [0, 0, 1, 0], [], []>} : vector<1x32xbf16>, vector<8x32xbf16>, vector<1x8xf32> -> vector<1x8xf32>
    %c0_30 = arith.constant 0 : index
    %c0_31 = arith.constant 0 : index
    %74 = vector.load %arg7[%c0_30, %c0_31] : memref<1x1xf32, #tpu.memory_space<vmem>>, vector<1x1xf32>
    %75 = vector.broadcast %74 : vector<1x1xf32> to vector<1x8xf32>
    %76 = arith.addf %73, %75 : vector<1x8xf32>
    %c0_32 = arith.constant 0 : index
    %c0_33 = arith.constant 0 : index
    %c0_34 = arith.constant 0 : index
    %77 = vector.load %arg8[%c0_32, %c0_33, %c0_34] : memref<1x1x8xf32, #tpu.memory_space<vmem>>, vector<1x1x8xf32>
    %78 = vector.shape_cast %77 : vector<1x1x8xf32> to vector<1x8xf32>
    %79 = vector.shape_cast %76 : vector<1x8xf32> to vector<1x1x8xf32>
    tpu.vector_store %arg8[%c0_32, %c0_33, %c0_34], %79 {strides = array<i32>} : memref<1x1x8xf32, #tpu.memory_space<vmem>>, vector<1x1x8xf32>,
    return
  }
  func.func @transform_0(%arg0: i32) -> (i32, i32) {
    %c0_i32 = arith.constant 0 : i32
    %c0_i32_0 = arith.constant 0 : i32
    return %arg0, %c0_i32 : i32, i32
  }
  func.func @transform_1(%arg0: i32) -> (i32, i32) {
    %c0_i32 = arith.constant 0 : i32
    %c0_i32_0 = arith.constant 0 : i32
    %c0_i32_1 = arith.constant 0 : i32
    return %c0_i32, %c0_i32_0 : i32, i32
  }
  func.func @transform_2(%arg0: i32) -> (i32, i32) {
    %c0_i32 = arith.constant 0 : i32
    %c0_i32_0 = arith.constant 0 : i32
    %c0_i32_1 = arith.constant 0 : i32
    return %c0_i32, %c0_i32_0 : i32, i32
  }
  func.func @transform_3(%arg0: i32) -> (i32, i32) {
    %c0_i32 = arith.constant 0 : i32
    %c0_i32_0 = arith.constant 0 : i32
    %c0_i32_1 = arith.constant 0 : i32
    return %c0_i32, %c0_i32_0 : i32, i32
  }
  func.func @transform_4(%arg0: i32) -> (i32, i32) {
    %c0_i32 = arith.constant 0 : i32
    %c0_i32_0 = arith.constant 0 : i32
    %c0_i32_1 = arith.constant 0 : i32
    return %c0_i32, %c0_i32_0 : i32, i32
  }
  func.func @transform_5(%arg0: i32) -> (i32, i32) {
    %c0_i32 = arith.constant 0 : i32
    %c0_i32_0 = arith.constant 0 : i32
    %c0_i32_1 = arith.constant 0 : i32
    return %c0_i32, %c0_i32_0 : i32, i32
  }
  func.func @transform_6(%arg0: i32) -> (i32, i32) {
    %c0_i32 = arith.constant 0 : i32
    %c0_i32_0 = arith.constant 0 : i32
    %c0_i32_1 = arith.constant 0 : i32
    return %c0_i32, %c0_i32_0 : i32, i32
  }
  func.func @transform_7(%arg0: i32) -> (i32, i32, i32) {
    %c0_i32 = arith.constant 0 : i32
    %c0_i32_0 = arith.constant 0 : i32
    %c0_i32_1 = arith.constant 0 : i32
    return %arg0, %c0_i32, %c0_i32_0 : i32, i32, i32
  }
}

</mosaic_0001>

<bundles_post_ra>
// kernel: tpu_custom_call.1
= control target key start
LH: loop header
LB: loop body
LE: loop exit
PB: predicated region body
PF: predicated region fallthrough
CT: control target
= control target key end

     0   :  { %s505_s0 = inlined_call_operand.hbm [shape: f32[8,16], index: 0, kind: input, shape index: {}]   ;;  %s506_s1 = inlined_call_operand.hbm [shape: bf16[16,32], index: 1, kind: input, shape index: {}]   ;;  %s507_s2 = inlined_call_operand.vmem [shape: f32[1,32], index: 2, kind: input, shape index: {}]   ;;  %s508_s3 = inlined_call_operand.hbm [shape: bf16[32,32], index: 3, kind: input, shape index: {}]   ;;  %s509_s4 = inlined_call_operand.vmem [shape: f32[1,32], index: 4, kind: input, shape index: {}]   ;;  %s510_s5 = inlined_call_operand.vmem [shape: bf16[1,32], index: 5, kind: input, shape index: {}]   ;;  %s511_s6 = inlined_call_operand.<no memory space> [shape: f32[1,1], index: 6, kind: input, shape index: {}]   ;;  %s512_s7 = inlined_call_operand.hbm [shape: f32[1,1,8], index: 7, kind: output, shape index: {}]  }
   0x1   :  { %v12_v0 = vstv %s511_s6 }
   0x2   :  { %13 = vst [vmem:[#allocation2] sm:$0x1] %v12_v0 }
   0x3   :  { %14 = vsyncpa [#allocation4], 0 }
   0x4   :  { %15 = vsyncpa [#allocation7], 0  ;;  %s32_s28 = sshll.u32 %s506_s1, 4  ;;  %s33_s28 = int_to_ptr.hbm [resolvable:$true] %s32_s28 }
   0x5   :  { %16 = vsyncpa [#allocation5], 0  ;;  %s422_s29 = smov [#allocation6]   ;;  %s22_s10 = sshll.u32 %s505_s0, 4  ;;  %s23_s10 = int_to_ptr.hbm [resolvable:$true] %s22_s10 }
   0x6   :  { %s34_s30 = sshll.u32 %s422_s29, 4  ;;  %s423_s11 = smov 64   ;;  %s35_s30 = int_to_ptr.vmem [resolvable:$true] %s34_s30 }
   0x7   :  { %s424_s12 = smov 4   ;;  %s425_s6 = smov [#allocation3]  }
   0x8   :  { %40 = dma.hbm_to_vmem [thread:$0]  %s33_s28, 128, %s35_s30, [#allocation7], %s423_s11, %s423_s11, %s424_s12  }
   0x9   :  { %s24_s13 = sshll.u32 %s425_s6, 4  ;;  %s47_s16 = sshll.u32 %s508_s3, 4  ;;  %s25_s13 = int_to_ptr.vmem [resolvable:$true] %s24_s13  ;;  %s48_s16 = int_to_ptr.hbm [resolvable:$true] %s47_s16 }
   0xa   :  { %27 = dma.hbm_to_vmem [thread:$0]  %s23_s10, 128, %s25_s13, [#allocation4]  }
   0xb   :  { %s426_s1 = smov [#allocation8]  }
   0xc   :  { %s49_s17 = sshll.u32 %s426_s1, 4  ;;  %s50_s17 = int_to_ptr.vmem [resolvable:$true] %s49_s17 }
   0xd   :  { %55 = dma.hbm_to_vmem [thread:$0]  %s48_s16, 256, %s50_s17, [#allocation7], %s423_s11, %s423_s11, %s424_s12  }
   0xe   :  { %416 = dma.done.wait [#allocation4], 128  }
   0xf   :  { %417 = vsyncadd [#allocation4], 4294967168 }
  0x10   :  { %418 = dma.done.wait [#allocation7], 384  }
  0x11   :  { %419 = vsyncadd [#allocation7], 4294966912  ;;  %vm76_vm0 = vcmask 130048   ;;  %v75_v1 = vld [vmem:[#allocation3] sm:$0xff]  ;;  %v427_v5 = vmov 16.0   ;;  %v295_v10 = vld [vmem:[#allocation6] sm:$0xff] }
  0x12   :  { %v77_v2 = vsel %vm76_vm0, %v75_v1, 0.0  ;;  %v88_v3 = vmul.f32 %v75_v1, %v75_v1  ;;  %310 = vrcp.f32 %v427_v5  ;;  %131 = vmatpush.bf16.msra.mxu0 %v295_v10  ;;  %v308_v30 = vld [vmem:[%s507_s2] ss:$0 sm:$0xff]  ;;  %vm138_vm5 = vcmask 261120   ;;  %v296_v45 = vld [vmem:[#allocation8] sm:$0xff]  ;;  %s430_s20 = smov [#allocation9]  }
  0x13   :  { %78 = vadd.xlane.f32.xlu0 %v77_v2  ;;  %v428_v38 = vmov 32.0   ;;  %v297_v43 = vld [vmem:[#allocation8 + $0x8] sm:$0xff]  ;;  %s267_s21 = sshll.u32 %s430_s20, 4  ;;  %s269_s24 = sshll.u32 %s512_s7, 4  ;;  %vm260_vm13 = vcmask 57344   ;;  %s268_s21 = int_to_ptr.vmem [resolvable:$true] %s267_s21  ;;  %s270_s24 = int_to_ptr.hbm [resolvable:$true] %s269_s24 }
  0x14   :  { %v89_v4 = vsel %vm76_vm0, %v88_v3, 0.0  ;;  %200 = vmatpush.bf16.msra.mxu1 %v297_v43  ;;  %v309_v0 = vld [vmem:[%s509_s4] ss:$0 sm:$0xff] }
  0x18   :  { %v311_v6 = vpop.eup %310  ;;  %201 = vmatpush.bf16.msra.mxu1 %v296_v45 }
  0x19   :  { %v81_v7 = vmul.f32 16.0, %v311_v6  ;;  %vm85_vm1 = vweird.f32 %v311_v6 }
  0x1b   :  { %90 = vadd.xlane.f32.xlu0 %v89_v4  ;;  %v82_v8 = vsub.f32 1.0, %v81_v7 }
  0x1d   :  { %v83_v9 = vmul.f32 %v311_v6, %v82_v8 }
  0x1f   :  { %v84_v11 = vadd.f32 %v311_v6, %v83_v9 }
  0x21   :  { %v86_v13 = vsel %vm85_vm1, %v311_v6, %v84_v11 }
  0x86   :  { %v79_v12 = vpop.xlane.xlu0 %78 }
  0x87   :  { %v87_v14 = vmul.f32 %v86_v13, %v79_v12 }
  0x89   :  { %v93_v16 = vmul.f32 %v87_v14, %v87_v14  ;;  %v95_v26 = vsub.f32 %v75_v1, %v87_v14 }
  0x8e   :  { %v91_v15 = vpop.xlane.xlu0 %90 }
  0x8f   :  { %v92_v17 = vmul.f32 %v91_v15, %v86_v13  ;;  %v234_v15 = vld [vmem:[#allocation2] sm:$0x1] }
  0x91   :  { %v94_v18 = vsub.f32 %v92_v17, %v93_v16  ;;  %v429_v16 = vmov 0  }
  0x92   :  { %307 = vset.pattern.permute.xlu0 %v429_v16 }
  0x93   :  { %v96_v19 = vadd.f32 1e-05, %v94_v18  ;;  %237 = vperm.xlu0 %307, %v234_v15  }
  0x95   :  { %312 = vrsqrt.f32 %v96_v19  ;;  %vm103_vm3 = vweird.f32 %v96_v19 }
  0x96   :  { %314 = vrcp.f32 %v428_v38 }
  0x9b   :  { %v313_v20 = vpop.eup %312 }
  0x9c   :  { %v98_v21 = vmul.f32 %v313_v20, %v96_v19  ;;  %vm104_vm2 = vweird.f32 %v313_v20  ;;  %v315_v39 = vpop.eup %314 }
  0x9d   :  { %vm105_vm4 = vmor %vm103_vm3, %vm104_vm2  ;;  %v143_v40 = vmul.f32 32.0, %v315_v39  ;;  %vm147_vm6 = vweird.f32 %v315_v39 }
  0x9e   :  { %v99_v22 = vmul.f32 %v313_v20, %v98_v21 }
  0x9f   :  { %v144_v41 = vsub.f32 1.0, %v143_v40 }
  0xa0   :  { %v100_v23 = vmul.f32 0.5, %v99_v22 }
  0xa1   :  { %v145_v42 = vmul.f32 %v315_v39, %v144_v41 }
  0xa2   :  { %v101_v24 = vsub.f32 1.5, %v100_v23 }
  0xa3   :  { %v146_v44 = vadd.f32 %v315_v39, %v145_v42 }
  0xa4   :  { %v102_v25 = vmul.f32 %v313_v20, %v101_v24 }
  0xa5   :  { %v148_v47 = vsel %vm147_vm6, %v315_v39, %v146_v44 }
  0xa6   :  { %v106_v27 = vsel %vm105_vm4, %v313_v20, %v102_v25 }
  0xa7   :  { %v107_v28 = vmul.f32 %v106_v27, %v95_v26 }
  0xa9   :  { %v108_v29 = vpack.c.bf16 %v107_v28, %v107_v28  ;;  %v232_v28 = vld [vmem:[%s510_s5] sm:$0x1] }
  0xab   :  { %284 = vmatmul.msk.bf16.vlgmr.msra.gmra.mxu0 %vm76_vm0, %v108_v29 }
 0x105   :  { %v238_v29 = vpop.permute.xlu0 %237 }
 0x128   :  { %v133_v31 = vpop.f32.mrf.mxu0 }
 0x129   :  { %v134_v32 = vadd.f32 %v308_v30, %v133_v31  ;;  %v240_v30 = vperm.slane %v238_v29, 0 }
 0x12b   :  { %v137_v33 = vmax.f32 %v134_v32, 0.0 }
 0x12d   :  { %v139_v34 = vsel %vm138_vm5, %v137_v33, 0.0  ;;  %v150_v36 = vmul.f32 %v137_v33, %v137_v33 }
 0x12e   :  { %140 = vadd.xlane.f32.xlu1 %v139_v34 }
 0x12f   :  { %v151_v37 = vsel %vm138_vm5, %v150_v36, 0.0 }
 0x130   :  { %v135_v35 = vpop.f32.mrf.mxu0 }
 0x136   :  { %152 = vadd.xlane.f32.xlu1 %v151_v37 }
 0x1a1   :  { %v141_v46 = vpop.xlane.xlu1 %140 }
 0x1a2   :  { %v149_v48 = vmul.f32 %v148_v47, %v141_v46 }
 0x1a4   :  { %v155_v50 = vmul.f32 %v149_v48, %v149_v48  ;;  %v157_v60 = vsub.f32 %v137_v33, %v149_v48 }
 0x1a9   :  { %v153_v49 = vpop.xlane.xlu1 %152 }
 0x1aa   :  { %v154_v51 = vmul.f32 %v153_v49, %v148_v47 }
 0x1ac   :  { %v156_v52 = vsub.f32 %v154_v51, %v155_v50 }
 0x1ae   :  { %v158_v53 = vadd.f32 1e-05, %v156_v52 }
 0x1b0   :  { %316 = vrsqrt.f32 %v158_v53  ;;  %vm165_vm8 = vweird.f32 %v158_v53 }
 0x1b6   :  { %v317_v54 = vpop.eup %316 }
 0x1b7   :  { %v160_v55 = vmul.f32 %v317_v54, %v158_v53  ;;  %vm166_vm7 = vweird.f32 %v317_v54 }
 0x1b8   :  { %vm167_vm9 = vmor %vm165_vm8, %vm166_vm7 }
 0x1b9   :  { %v161_v56 = vmul.f32 %v317_v54, %v160_v55 }
 0x1bb   :  { %v162_v57 = vmul.f32 0.5, %v161_v56 }
 0x1bd   :  { %v163_v58 = vsub.f32 1.5, %v162_v57 }
 0x1bf   :  { %v164_v59 = vmul.f32 %v317_v54, %v163_v58 }
 0x1c1   :  { %v168_v61 = vsel %vm167_vm9, %v317_v54, %v164_v59 }
 0x1c2   :  { %v169_v62 = vmul.f32 %v168_v61, %v157_v60 }
 0x1c4   :  { %v170_v63 = vpack.c.bf16 %v169_v62, %v169_v62 }
 0x1c6   :  { %293 = vmatmul.msk.bf16.vlgmr.msra.gmra.mxu1 %vm138_vm5, %v170_v63 }
 0x243   :  { %v203_v1 = vpop.f32.mrf.mxu1 }
 0x244   :  { %v204_v2 = vadd.f32 %v309_v0, %v203_v1 }
 0x246   :  { %v207_v3 = vmax.f32 %v204_v2, 0.0 }
 0x248   :  { %v208_v4 = vsel %vm138_vm5, %v207_v3, 0.0  ;;  %v212_v6 = vmul.f32 %v207_v3, %v207_v3 }
 0x249   :  { %209 = vadd.xlane.f32.xlu2 %v208_v4 }
 0x24a   :  { %v213_v7 = vsel %vm138_vm5, %v212_v6, 0.0 }
 0x24b   :  { %v205_v5 = vpop.f32.mrf.mxu1 }
 0x251   :  { %214 = vadd.xlane.f32.xlu2 %v213_v7 }
 0x2bc   :  { %v210_v8 = vpop.xlane.xlu2 %209 }
 0x2bd   :  { %v211_v9 = vmul.f32 %v210_v8, %v148_v47 }
 0x2bf   :  { %v217_v11 = vmul.f32 %v211_v9, %v211_v9  ;;  %v219_v23 = vsub.f32 %v207_v3, %v211_v9 }
 0x2c4   :  { %v215_v10 = vpop.xlane.xlu2 %214 }
 0x2c5   :  { %v216_v12 = vmul.f32 %v215_v10, %v148_v47 }
 0x2c7   :  { %v218_v13 = vsub.f32 %v216_v12, %v217_v11 }
 0x2c9   :  { %v220_v14 = vadd.f32 1e-05, %v218_v13 }
 0x2cb   :  { %318 = vrsqrt.f32 %v220_v14  ;;  %vm227_vm11 = vweird.f32 %v220_v14 }
 0x2d1   :  { %v319_v17 = vpop.eup %318 }
 0x2d2   :  { %v222_v18 = vmul.f32 %v319_v17, %v220_v14  ;;  %vm228_vm10 = vweird.f32 %v319_v17 }
 0x2d3   :  { %vm229_vm12 = vmor %vm227_vm11, %vm228_vm10 }
 0x2d4   :  { %v223_v19 = vmul.f32 %v319_v17, %v222_v18 }
 0x2d6   :  { %v224_v20 = vmul.f32 0.5, %v223_v19 }
 0x2d8   :  { %v225_v21 = vsub.f32 1.5, %v224_v20 }
 0x2da   :  { %v226_v22 = vmul.f32 %v319_v17, %v225_v21 }
 0x2dc   :  { %v230_v24 = vsel %vm229_vm12, %v319_v17, %v226_v22 }
 0x2dd   :  { %v231_v25 = vmul.f32 %v230_v24, %v219_v23 }
 0x2df   :  { %v233_v26 = vpack.c.bf16 %v231_v25, %v231_v25 }
 0x2e1   :  { %v245_v27 = vsel %vm138_vm5, %v233_v26, 0 }
 0x2e2   :  { %254 = vmatpush.bf16.xpose.msra.mxu2 %v245_v27 }
 0x2e9   :  { %294 = vmatmul.msk.bf16.vlgmr.msra.gmra.mxu2 %vm138_vm5, %v232_v28 }
 0x36c   :  { %v256_v31 = vpop.f32.mrf.mxu2 }
 0x36d   :  { %v257_v32 = vadd.f32 %v256_v31, %v240_v30 }
 0x36f   :  { %261 = vst.msk [vmem:[#allocation9] sm:$0x1] %vm260_vm13, %v257_v32 }
 0x370   :  { %272 = dma.vmem_to_hbm [thread:$0]  %s268_s21, 16, %s270_s24, [#allocation5]  }
 0x374   :  { %v258_v33 = vpop.f32.mrf.mxu2 }
 0x375   :  { %420 = dma.done.wait [#allocation5], 16  }
 0x376   :  { %421 = vsyncadd [#allocation5], 4294967280 }
 0x377   :  { %277 = vsyncpa [#allocation4], 1 }
 0x378   :  { %278 = vsyncpa [#allocation7], 1 }
 0x379   :  { %279 = vsyncpa [#allocation5], 1 }

</bundles_post_ra>
